<compile_context>
chip_gen: v5e
topology: v5e:2x2
jax: 0.10.0
libtpu: 0.0.40
codegen_flags: <defaults>
</compile_context>

<pallas_src>
import math
import jax
import jax.numpy as jnp
from jax.experimental import pallas as pl
from jax.experimental.pallas import tpu as pltpu


def _round_up(x, m):
    return ((x + m - 1) // m) * m


def _support_kernel(x_ref, w_ref, s_ref):
    # Feature transform for one row tile: support = X_tile @ W  (MXU, f32 accumulate)
    s_ref[...] = jnp.dot(
        x_ref[...], w_ref[...], preferred_element_type=jnp.float32
    ).astype(s_ref.dtype)


def _make_aggregate_kernel(tk, support_resident, use_scratch):
    """Build the aggregate kernel: out_tile = sum_k adj[i, k] @ support[k] (+ bias once)."""

    def _support_tile(s_ref, k):
        if support_resident:
            # Whole support array is VMEM-resident; take the k-th (tk, fp) slice.
            start = pl.multiple_of(k * tk, 128)
            return s_ref[pl.ds(start, tk), :]
        return s_ref[...]

    if use_scratch:
        # Generic path: accumulate in an f32 scratch, cast on the last K step.
        def kernel(adj_ref, s_ref, b_ref, out_ref, acc_ref):
            k = pl.program_id(1)

            @pl.when(k == 0)
            def _init():
                acc_ref[...] = jnp.zeros_like(acc_ref)

            acc_ref[...] += jnp.dot(
                adj_ref[...], _support_tile(s_ref, k),
                preferred_element_type=jnp.float32)

            @pl.when(k == pl.num_programs(1) - 1)
            def _finalize():
                out_ref[...] = (acc_ref[...] + b_ref[...]).astype(out_ref.dtype)
    else:
        # f32 output: the output block is resident across k -> accumulate in place,
        # no scratch, bias folded into the init step.
        def kernel(adj_ref, s_ref, b_ref, out_ref):
            k = pl.program_id(1)

            @pl.when(k == 0)
            def _init():
                out_ref[...] = jnp.broadcast_to(b_ref[...], out_ref.shape)

            out_ref[...] += jnp.dot(
                adj_ref[...], _support_tile(s_ref, k),
                preferred_element_type=jnp.float32)

    return kernel


def graph_convolution(x, adj, weight, bias=None, *, tm=None, tk=None,
                      compute_dtype=jnp.bfloat16, support_resident=None):
    """GCN layer forward: adj @ (x @ weight) + bias.

    x:      (N, F_in)    float32
    adj:    (N, N)       dense adjacency (torch.spmm treated as dense matmul)
    weight: (F_in, F_out)
    bias:   (F_out,) or None
    compute_dtype: MXU input dtype (bf16 recommended); accumulation is always f32.
    tm, tk: optional aggregate-kernel tiles (must be multiples of 128).
    support_resident: force/disable the VMEM-resident support path (None = auto).
    """
    n, f_in = x.shape
    f_out = weight.shape[1]
    assert adj.shape == (n, n)
    out_dtype = x.dtype

    c_bytes = jnp.dtype(compute_dtype).itemsize
    o_bytes = jnp.dtype(out_dtype).itemsize

    kind = jax.devices()[0].device_kind.lower()
    is_v5 = "v5" in kind
    is_v7 = "v7" in kind

    # Lane-dense output: pad feature dim to a multiple of 128.
    fp = _round_up(f_out, 128)

    # Aggregate-kernel tile defaults (bandwidth-bound on adj -> big tiles).
    if tm is None:
        tm = 256 if is_v5 else 512
    if tk is None:
        tk = 4096 if is_v7 else 2048

    # Clamp to the (128-rounded) problem size; stays a multiple of 128.
    tm = min(tm, _round_up(n, 128))
    tk = min(tk, _round_up(n, 128))

    # v7x has 2 TensorCores: make sure the parallel row axis has >= 2 tiles when possible.
    if is_v7 and n > 128 and _round_up(n, tm) // tm < 2:
        tm = max(128, _round_up(-(-n // 2), 128))

    # VMEM budget: v7x has 64 MiB physical -> stay at 40 MiB; v5e/v6e (128 MiB) -> 64 MiB.
    budget = (40 if is_v7 else 64) * 1024 * 1024

    def _agg_vmem(tm_, tk_, sup_bytes):
        return (2 * tm_ * tk_ * c_bytes      # adj tile, double-buffered
                + sup_bytes                  # support (tiled or resident)
                + 2 * tm_ * fp * o_bytes     # output tile, double-buffered
                + tm_ * fp * 4               # f32 accumulator (worst case)
                + 2 * fp * 4                 # bias
                + (2 << 20))                 # headroom for compiler internals

    # Shrink tiles (gated by fp) so the double-buffered footprint fits the budget.
    while _agg_vmem(tm, tk, 2 * tk * fp * c_bytes) > budget and tk > 512:
        tk = max(512, _round_up(tk // 2, 128))
    while _agg_vmem(tm, tk, 2 * tk * fp * c_bytes) > budget and tm > 128:
        tm = max(128, _round_up(tm // 2, 128))

    # Independent padding: rows to tm, cols to tk (exact grid coverage for any N).
    n_row_pad = _round_up(n, tm)     # adj rows / output rows
    n_col_pad = _round_up(n, tk)     # adj cols / x & support rows

    if support_resident is None:
        res_bytes = 2 * n_col_pad * fp * c_bytes
        support_resident = (res_bytes <= 8 * 1024 * 1024
                            and _agg_vmem(tm, tk, res_bytes) <= budget)

    # Support-kernel row tile: biggest of {1024,512,256,128} that divides n_col_pad.
    for tms in (1024, 512, 256, 128):
        if n_col_pad % tms == 0:
            break

    # --- operand preparation: cast + minimal zero-padding (skipped when not needed) ---
    w_p = weight.astype(jnp.float32)
    if fp != f_out:
        w_p = jnp.zeros((f_in, fp), jnp.float32).at[:, :f_out].set(w_p)
    w_p = w_p.astype(compute_dtype)

    b_p = jnp.zeros((1, fp), jnp.float32)
    if bias is not None:
        b_p = b_p.at[0, :f_out].set(bias.astype(jnp.float32))

    x_p = x.astype(compute_dtype)
    if n_col_pad != n:
        x_p = jnp.zeros((n_col_pad, f_in), compute_dtype).at[:n, :].set(x_p)

    adj_p = adj.astype(compute_dtype)
    if (n_row_pad, n_col_pad) != (n, n):
        adj_p = jnp.zeros((n_row_pad, n_col_pad), compute_dtype).at[:n, :n].set(adj_p)

    cparams_1d = pltpu.CompilerParams(
        dimension_semantics=("parallel",), vmem_limit_bytes=budget)
    cparams_2d = pltpu.CompilerParams(
        dimension_semantics=("parallel", "arbitrary"), vmem_limit_bytes=budget)

    # --- kernel 1: support = X @ W (computed once, large row tiles) ---
    support = pl.pallas_call(
        _support_kernel,
        out_shape=jax.ShapeDtypeStruct((n_col_pad, fp), compute_dtype),
        grid_spec=pltpu.PrefetchScalarGridSpec(
            num_scalar_prefetch=0,
            grid=(n_col_pad // tms,),
            in_specs=[
                pl.BlockSpec((tms, f_in), lambda i: (i, 0)),
                pl.BlockSpec((f_in, fp), lambda i: (0, 0)),
            ],
            out_specs=pl.BlockSpec((tms, fp), lambda i: (i, 0)),
        ),
        compiler_params=cparams_1d,
    )(x_p, w_p)

    # --- kernel 2: out = adj @ support + b (K-tiled reduction) ---
    use_scratch = (out_dtype != jnp.float32)
    agg_kernel = _make_aggregate_kernel(tk, support_resident, use_scratch)

    if support_resident:
        # Constant index map + full extent: DMA'd once, stays VMEM-resident for the whole grid.
        sup_spec = pl.BlockSpec((n_col_pad, fp), lambda i, k: (0, 0))
    else:
        sup_spec = pl.BlockSpec((tk, fp), lambda i, k: (k, 0))

    scratch = [pltpu.VMEM((tm, fp), jnp.float32)] if use_scratch else []

    out_p = pl.pallas_call(
        agg_kernel,
        out_shape=jax.ShapeDtypeStruct((n_row_pad, fp), out_dtype),
        grid_spec=pltpu.PrefetchScalarGridSpec(
            num_scalar_prefetch=0,
            grid=(n_row_pad // tm, n_col_pad // tk),
            in_specs=[
                pl.BlockSpec((tm, tk), lambda i, k: (i, k)),   # adj row/col tile
                sup_spec,                                      # support
                pl.BlockSpec((1, fp), lambda i, k: (0, 0)),    # bias
            ],
            out_specs=pl.BlockSpec((tm, fp), lambda i, k: (i, 0)),
            scratch_shapes=scratch,
        ),
        compiler_params=cparams_2d,
    )(adj_p, support, b_p)

    # Strip row padding and feature-lane padding.
    return out_p[:n, :f_out]


if __name__ == "__main__":
    # Small deterministic setup: 200 nodes (not a multiple of 128), 64 -> 32 features.
    N, F_IN, F_OUT = 200, 64, 32

    key = jax.random.PRNGKey(0)
    k_x, k_adj, k_w, k_b = jax.random.split(key, 4)

    x = jax.random.normal(k_x, (N, F_IN), dtype=jnp.float32)

    # Symmetric, row-normalized dense adjacency (stand-in for the sparse adj).
    a = (jax.random.uniform(k_adj, (N, N)) < 0.05).astype(jnp.float32)
    a = jnp.minimum(a + a.T + jnp.eye(N, dtype=jnp.float32), 1.0)
    adj = a / jnp.sum(a, axis=1, keepdims=True)

    # Parameter init matching reset_parameters(): uniform(-stdv, stdv), stdv = 1/sqrt(out).
    stdv = 1.0 / math.sqrt(F_OUT)
    weight = jax.random.uniform(k_w, (F_IN, F_OUT), minval=-stdv, maxval=stdv,
                                dtype=jnp.float32)
    bias = jax.random.uniform(k_b, (F_OUT,), minval=-stdv, maxval=stdv,
                              dtype=jnp.float32)

    ref = jnp.dot(adj, jnp.dot(x, weight, precision=jax.lax.Precision.HIGHEST),
                  precision=jax.lax.Precision.HIGHEST) + bias

    # f32 path (tight check) and default bf16-MXU path (looser check).
    out_f32 = graph_convolution(x, adj, weight, bias, compute_dtype=jnp.float32)
    out_bf16 = graph_convolution(x, adj, weight, bias)
    out_f32, out_bf16 = jax.block_until_ready((out_f32, out_bf16))

    assert out_f32.shape == (N, F_OUT)
    assert out_bf16.shape == (N, F_OUT)
    assert jnp.allclose(out_f32, ref, atol=2e-3, rtol=2e-3)
    assert jnp.allclose(out_bf16, ref, atol=5e-2, rtol=5e-2)

    # Second config: N=300 (the shape class that hit the old divisibility bug), with a forced
    # multi-tile grid on both axes and the non-resident (K-tiled) support path.
    N2 = 300
    k_x2, k_adj2 = jax.random.split(jax.random.PRNGKey(1), 2)
    x2 = jax.random.normal(k_x2, (N2, F_IN), dtype=jnp.float32)
    a2 = (jax.random.uniform(k_adj2, (N2, N2)) < 0.05).astype(jnp.float32)
    a2 = jnp.minimum(a2 + a2.T + jnp.eye(N2, dtype=jnp.float32), 1.0)
    adj2 = a2 / jnp.sum(a2, axis=1, keepdims=True)

    out2 = graph_convolution(x2, adj2, weight, bias, tm=256, tk=128,
                             compute_dtype=jnp.float32, support_resident=False)
    out2 = jax.block_until_ready(out2)
    ref2 = jnp.dot(adj2, jnp.dot(x2, weight, precision=jax.lax.Precision.HIGHEST),
                   precision=jax.lax.Precision.HIGHEST) + bias
    assert out2.shape == (N2, F_OUT)
    assert jnp.allclose(out2, ref2, atol=2e-3, rtol=2e-3)

    print("KERNEL_OK")
</pallas_src>

<mosaic_0001>
module attributes {stable_mosaic.version = 11 : i64} {
  func.func @_support_kernel(%arg0: i32, %arg1: memref<256x64xf32, #tpu.memory_space<vmem>>, %arg2: memref<64x128xf32, #tpu.memory_space<vmem>>, %arg3: memref<256x128xf32, #tpu.memory_space<vmem>>) attributes {dimension_semantics = [#tpu.dimension_semantics<parallel>], iteration_bounds = array<i64: 1>, scalar_prefetch = 0 : i64, scratch_operands = 0 : i64, tpu.core_type = #tpu.core_type<tc>, window_params = [{transform_indices = @transform_0, window_bounds = array<i64: 256, 64>}, {pipeline_mode = #tpu.pipeline_mode<synchronous>, transform_indices = @transform_1, window_bounds = array<i64: 64, 128>}, {transform_indices = @transform_2, window_bounds = array<i64: 256, 128>}]} {
    %c0 = arith.constant 0 : index
    %c0_0 = arith.constant 0 : index
    %0 = vector.load %arg1[%c0, %c0_0] : memref<256x64xf32, #tpu.memory_space<vmem>>, vector<256x64xf32>
    %c0_1 = arith.constant 0 : index
    %c0_2 = arith.constant 0 : index
    %1 = vector.load %arg2[%c0_1, %c0_2] : memref<64x128xf32, #tpu.memory_space<vmem>>, vector<64x128xf32>
    %cst = arith.constant dense<0.000000e+00> : vector<256x128xf32>
    %2 = tpu.matmul %0, %1, %cst {dimension_numbers = #tpu.dot_dimension_numbers<[1], [0], [0], [1], [0, 0, 1, 1], [], []>} : vector<256x64xf32>, vector<64x128xf32>, vector<256x128xf32> -> vector<256x128xf32>
    %c0_3 = arith.constant 0 : index
    %c0_4 = arith.constant 0 : index
    %3 = vector.load %arg3[%c0_3, %c0_4] : memref<256x128xf32, #tpu.memory_space<vmem>>, vector<256x128xf32>
    tpu.vector_store %arg3[%c0_3, %c0_4], %2 {strides = array<i32>} : memref<256x128xf32, #tpu.memory_space<vmem>>, vector<256x128xf32>,
    return
  }
  func.func @transform_0(%arg0: i32) -> (i32, i32) {
    %c0_i32 = arith.constant 0 : i32
    %c0_i32_0 = arith.constant 0 : i32
    return %arg0, %c0_i32 : i32, i32
  }
  func.func @transform_1(%arg0: i32) -> (i32, i32) {
    %c0_i32 = arith.constant 0 : i32
    %c0_i32_0 = arith.constant 0 : i32
    %c0_i32_1 = arith.constant 0 : i32
    return %c0_i32, %c0_i32_0 : i32, i32
  }
  func.func @transform_2(%arg0: i32) -> (i32, i32) {
    %c0_i32 = arith.constant 0 : i32
    %c0_i32_0 = arith.constant 0 : i32
    return %arg0, %c0_i32 : i32, i32
  }
}

</mosaic_0001>

<bundles_post_ra>
// kernel: tpu_custom_call.1
= control target key start
LH: loop header
LB: loop body
LE: loop exit
PB: predicated region body
PF: predicated region fallthrough
CT: control target
= control target key end

     0   :  { %s570_s0 = inlined_call_operand.vmem [shape: f32[256,64], index: 0, kind: input, shape index: {}]   ;;  %s571_s1 = inlined_call_operand.vmem [shape: f32[64,128], index: 1, kind: input, shape index: {}]   ;;  %s572_s2 = inlined_call_operand.hbm [shape: f32[256,128], index: 2, kind: output, shape index: {}]  }
   0x1   :  { %v51_v0 = vld [vmem:[%s571_s1 + $0x38] sm:$0xff]  ;;  %v50_v1 = vld [vmem:[%s571_s1 + $0x30] sm:$0xff]  ;;  %v49_v2 = vld [vmem:[%s571_s1 + $0x28] sm:$0xff] }
   0x2   :  { %345 = vmatpush.msra.mxu2 %v51_v0  ;;  %346 = vmatpush.msra.mxu3 %v51_v0  ;;  %v48_v3 = vld [vmem:[%s571_s1 + $0x20] sm:$0xff]  ;;  %v47_v4 = vld [vmem:[%s571_s1 + $0x18] sm:$0xff] }
   0x3   :  { %157 = vmatpush.msra.mxu0 %v51_v0  ;;  %344 = vmatpush.msra.mxu1 %v51_v0 }
   0x4   :  { %348 = vmatpush.msra.mxu2 %v50_v1  ;;  %349 = vmatpush.msra.mxu3 %v50_v1 }
   0x5   :  { %158 = vmatpush.msra.mxu0 %v50_v1  ;;  %347 = vmatpush.msra.mxu1 %v50_v1 }
   0x6   :  { %351 = vmatpush.msra.mxu2 %v49_v2  ;;  %352 = vmatpush.msra.mxu3 %v49_v2 }
   0x7   :  { %159 = vmatpush.msra.mxu0 %v49_v2  ;;  %350 = vmatpush.msra.mxu1 %v49_v2 }
   0x8   :  { %354 = vmatpush.msra.mxu2 %v48_v3  ;;  %355 = vmatpush.msra.mxu3 %v48_v3 }
   0x9   :  { %7 = vsyncpa [#allocation3], 0  ;;  %v46_v5 = vld [vmem:[%s571_s1 + $0x10] sm:$0xff]  ;;  %160 = vmatpush.msra.mxu0 %v48_v3  ;;  %353 = vmatpush.msra.mxu1 %v48_v3  ;;  %v45_v6 = vld [vmem:[%s571_s1 + $0x8] sm:$0xff]  ;;  %vm52_vm0 = vcmask 523264   ;;  %s300_s5 = sshll.u32 %s572_s2, 4  ;;  %s301_s5 = int_to_ptr.hbm [resolvable:$true] %s300_s5 }
   0xa   :  { %357 = vmatpush.msra.mxu2 %v47_v4  ;;  %358 = vmatpush.msra.mxu3 %v47_v4  ;;  %v44_v7 = vld [vmem:[%s571_s1] sm:$0xff]  ;;  %v29_v12 = vld [vmem:[%s570_s0 + $0x88] sm:$0xff]  ;;  %v30_v16 = vld [vmem:[%s570_s0 + $0x90] sm:$0xff]  ;;  %s398_s6 = smov 128   ;;  %s399_s7 = smov 8  }
   0xb   :  { %161 = vmatpush.msra.mxu0 %v47_v4  ;;  %356 = vmatpush.msra.mxu1 %v47_v4  ;;  %v28_v8 = vld [vmem:[%s570_s0 + $0x80] sm:$0xff]  ;;  %v37_v13 = vld [vmem:[%s570_s0 + $0xc8] sm:$0xff]  ;;  %v38_v17 = vld [vmem:[%s570_s0 + $0xd0] sm:$0xff] }
   0xc   :  { %360 = vmatpush.msra.mxu2 %v46_v5  ;;  %361 = vmatpush.msra.mxu3 %v46_v5  ;;  %v36_v9 = vld [vmem:[%s570_s0 + $0xc0] sm:$0xff]  ;;  %v13_v14 = vld [vmem:[%s570_s0 + $0x8] sm:$0xff]  ;;  %v14_v18 = vld [vmem:[%s570_s0 + $0x10] sm:$0xff] }
   0xd   :  { %162 = vmatpush.msra.mxu0 %v46_v5  ;;  %359 = vmatpush.msra.mxu1 %v46_v5  ;;  %v12_v10 = vld [vmem:[%s570_s0] sm:$0xff]  ;;  %v21_v15 = vld [vmem:[%s570_s0 + $0x48] sm:$0xff]  ;;  %v22_v19 = vld [vmem:[%s570_s0 + $0x50] sm:$0xff] }
   0xe   :  { %363 = vmatpush.msra.mxu2 %v45_v6  ;;  %364 = vmatpush.msra.mxu3 %v45_v6  ;;  %v20_v11 = vld [vmem:[%s570_s0 + $0x40] sm:$0xff]  ;;  %v31_v20 = vld [vmem:[%s570_s0 + $0x98] sm:$0xff]  ;;  %v33_v28 = vld [vmem:[%s570_s0 + $0xa8] sm:$0xff] }
   0xf   :  { %163 = vmatpush.msra.mxu0 %v45_v6  ;;  %362 = vmatpush.msra.mxu1 %v45_v6  ;;  %v39_v21 = vld [vmem:[%s570_s0 + $0xd8] sm:$0xff]  ;;  %v32_v24 = vld [vmem:[%s570_s0 + $0xa0] sm:$0xff]  ;;  %v41_v29 = vld [vmem:[%s570_s0 + $0xe8] sm:$0xff] }
  0x10   :  { %366 = vmatpush.msra.mxu2 %v44_v7  ;;  %367 = vmatpush.msra.mxu3 %v44_v7  ;;  %v15_v22 = vld [vmem:[%s570_s0 + $0x18] sm:$0xff]  ;;  %v40_v25 = vld [vmem:[%s570_s0 + $0xe0] sm:$0xff]  ;;  %v17_v30 = vld [vmem:[%s570_s0 + $0x28] sm:$0xff] }
  0x11   :  { %328 = vmatmul.msk.f32.vlgmr.msra.gmra.mxu2 %vm52_vm0, %v28_v8  ;;  %336 = vmatmul.msk.f32.vlgmr.msra.gmra.mxu3 %vm52_vm0, %v36_v9  ;;  %v23_v23 = vld [vmem:[%s570_s0 + $0x58] sm:$0xff]  ;;  %v16_v26 = vld [vmem:[%s570_s0 + $0x20] sm:$0xff]  ;;  %v25_v31 = vld [vmem:[%s570_s0 + $0x68] sm:$0xff] }
  0x12   :  { %164 = vmatpush.msra.mxu0 %v44_v7  ;;  %365 = vmatpush.msra.mxu1 %v44_v7  ;;  %v24_v27 = vld [vmem:[%s570_s0 + $0x60] sm:$0xff]  ;;  %v34_v32 = vld [vmem:[%s570_s0 + $0xb0] sm:$0xff]  ;;  %v35_v36 = vld [vmem:[%s570_s0 + $0xb8] sm:$0xff] }
  0x13   :  { %312 = vmatmul.msk.f32.vlgmr.msra.gmra.mxu0 %vm52_vm0, %v12_v10  ;;  %320 = vmatmul.msk.f32.vlgmr.msra.gmra.mxu1 %vm52_vm0, %v20_v11  ;;  %v42_v33 = vld [vmem:[%s570_s0 + $0xf0] sm:$0xff]  ;;  %v43_v37 = vld [vmem:[%s570_s0 + $0xf8] sm:$0xff] }
  0x14   :  { %v18_v34 = vld [vmem:[%s570_s0 + $0x30] sm:$0xff]  ;;  %v19_v38 = vld [vmem:[%s570_s0 + $0x38] sm:$0xff] }
  0x15   :  { %v26_v35 = vld [vmem:[%s570_s0 + $0x70] sm:$0xff]  ;;  %v27_v39 = vld [vmem:[%s570_s0 + $0x78] sm:$0xff]  ;;  %s397_s0 = smov [#allocation2]  }
  0x16   :  { %s298_s1 = sshll.u32 %s397_s0, 4  ;;  %s299_s1 = int_to_ptr.vmem [resolvable:$true] %s298_s1 }
  0x19   :  { %329 = vmatmul.msk.f32.gmra.mxu2 %vm52_vm0, %v29_v12  ;;  %337 = vmatmul.msk.f32.gmra.mxu3 %vm52_vm0, %v37_v13 }
  0x1b   :  { %313 = vmatmul.msk.f32.gmra.mxu0 %vm52_vm0, %v13_v14  ;;  %321 = vmatmul.msk.f32.gmra.mxu1 %vm52_vm0, %v21_v15 }
  0x21   :  { %330 = vmatmul.msk.f32.gmra.mxu2 %vm52_vm0, %v30_v16  ;;  %338 = vmatmul.msk.f32.gmra.mxu3 %vm52_vm0, %v38_v17 }
  0x23   :  { %314 = vmatmul.msk.f32.gmra.mxu0 %vm52_vm0, %v14_v18  ;;  %322 = vmatmul.msk.f32.gmra.mxu1 %vm52_vm0, %v22_v19 }
  0x29   :  { %331 = vmatmul.msk.f32.gmra.mxu2 %vm52_vm0, %v31_v20  ;;  %339 = vmatmul.msk.f32.gmra.mxu3 %vm52_vm0, %v39_v21 }
  0x2b   :  { %315 = vmatmul.msk.f32.gmra.mxu0 %vm52_vm0, %v15_v22  ;;  %323 = vmatmul.msk.f32.gmra.mxu1 %vm52_vm0, %v23_v23 }
  0x31   :  { %332 = vmatmul.msk.f32.gmra.mxu2 %vm52_vm0, %v32_v24  ;;  %340 = vmatmul.msk.f32.gmra.mxu3 %vm52_vm0, %v40_v25 }
  0x33   :  { %316 = vmatmul.msk.f32.gmra.mxu0 %vm52_vm0, %v16_v26  ;;  %324 = vmatmul.msk.f32.gmra.mxu1 %vm52_vm0, %v24_v27 }
  0x39   :  { %333 = vmatmul.msk.f32.gmra.mxu2 %vm52_vm0, %v33_v28  ;;  %341 = vmatmul.msk.f32.gmra.mxu3 %vm52_vm0, %v41_v29 }
  0x3b   :  { %317 = vmatmul.msk.f32.gmra.mxu0 %vm52_vm0, %v17_v30  ;;  %325 = vmatmul.msk.f32.gmra.mxu1 %vm52_vm0, %v25_v31 }
  0x41   :  { %334 = vmatmul.msk.f32.gmra.mxu2 %vm52_vm0, %v34_v32  ;;  %342 = vmatmul.msk.f32.gmra.mxu3 %vm52_vm0, %v42_v33 }
  0x43   :  { %318 = vmatmul.msk.f32.gmra.mxu0 %vm52_vm0, %v18_v34  ;;  %326 = vmatmul.msk.f32.gmra.mxu1 %vm52_vm0, %v26_v35 }
  0x49   :  { %335 = vmatmul.msk.f32.gmra.mxu2 %vm52_vm0, %v35_v36  ;;  %343 = vmatmul.msk.f32.gmra.mxu3 %vm52_vm0, %v43_v37 }
  0x4b   :  { %319 = vmatmul.msk.f32.gmra.mxu0 %vm52_vm0, %v19_v38  ;;  %327 = vmatmul.msk.f32.gmra.mxu1 %vm52_vm0, %v27_v39 }
  0x90   :  { %v166_v40 = vpop.f32.mrf.mxu0  ;;  %v190_v41 = vpop.f32.mrf.mxu1 }
  0x91   :  { %262 = vst [vmem:[#allocation2] sm:$0xff] %v166_v40 }
  0x92   :  { %270 = vst [vmem:[#allocation2 + $0x40] sm:$0xff] %v190_v41 }
  0x94   :  { %v214_v42 = vpop.f32.mrf.mxu2  ;;  %v238_v43 = vpop.f32.mrf.mxu3 }
  0x95   :  { %278 = vst [vmem:[#allocation2 + $0x80] sm:$0xff] %v214_v42 }
  0x96   :  { %286 = vst [vmem:[#allocation2 + $0xc0] sm:$0xff] %v238_v43 }
  0x98   :  { %v169_v44 = vpop.f32.mrf.mxu0  ;;  %v193_v45 = vpop.f32.mrf.mxu1 }
  0x99   :  { %263 = vst [vmem:[#allocation2 + $0x8] sm:$0xff] %v169_v44 }
  0x9a   :  { %271 = vst [vmem:[#allocation2 + $0x48] sm:$0xff] %v193_v45 }
  0x9c   :  { %v217_v46 = vpop.f32.mrf.mxu2  ;;  %v241_v47 = vpop.f32.mrf.mxu3 }
  0x9d   :  { %279 = vst [vmem:[#allocation2 + $0x88] sm:$0xff] %v217_v46 }
  0x9e   :  { %287 = vst [vmem:[#allocation2 + $0xc8] sm:$0xff] %v241_v47 }
  0xa0   :  { %v172_v48 = vpop.f32.mrf.mxu0  ;;  %v196_v49 = vpop.f32.mrf.mxu1 }
  0xa1   :  { %264 = vst [vmem:[#allocation2 + $0x10] sm:$0xff] %v172_v48 }
  0xa2   :  { %272 = vst [vmem:[#allocation2 + $0x50] sm:$0xff] %v196_v49 }
  0xa4   :  { %v220_v50 = vpop.f32.mrf.mxu2  ;;  %v244_v51 = vpop.f32.mrf.mxu3 }
  0xa5   :  { %280 = vst [vmem:[#allocation2 + $0x90] sm:$0xff] %v220_v50 }
  0xa6   :  { %288 = vst [vmem:[#allocation2 + $0xd0] sm:$0xff] %v244_v51 }
  0xa8   :  { %v175_v52 = vpop.f32.mrf.mxu0  ;;  %v199_v53 = vpop.f32.mrf.mxu1 }
  0xa9   :  { %265 = vst [vmem:[#allocation2 + $0x18] sm:$0xff] %v175_v52 }
  0xaa   :  { %273 = vst [vmem:[#allocation2 + $0x58] sm:$0xff] %v199_v53 }
  0xac   :  { %v223_v54 = vpop.f32.mrf.mxu2  ;;  %v247_v55 = vpop.f32.mrf.mxu3 }
  0xad   :  { %281 = vst [vmem:[#allocation2 + $0x98] sm:$0xff] %v223_v54 }
  0xae   :  { %289 = vst [vmem:[#allocation2 + $0xd8] sm:$0xff] %v247_v55 }
  0xb0   :  { %v178_v56 = vpop.f32.mrf.mxu0  ;;  %v202_v57 = vpop.f32.mrf.mxu1 }
  0xb1   :  { %266 = vst [vmem:[#allocation2 + $0x20] sm:$0xff] %v178_v56 }
  0xb2   :  { %274 = vst [vmem:[#allocation2 + $0x60] sm:$0xff] %v202_v57 }
  0xb4   :  { %v226_v58 = vpop.f32.mrf.mxu2  ;;  %v250_v59 = vpop.f32.mrf.mxu3 }
  0xb5   :  { %282 = vst [vmem:[#allocation2 + $0xa0] sm:$0xff] %v226_v58 }
  0xb6   :  { %290 = vst [vmem:[#allocation2 + $0xe0] sm:$0xff] %v250_v59 }
  0xb8   :  { %v181_v60 = vpop.f32.mrf.mxu0  ;;  %v205_v61 = vpop.f32.mrf.mxu1 }
  0xb9   :  { %267 = vst [vmem:[#allocation2 + $0x28] sm:$0xff] %v181_v60 }
  0xba   :  { %275 = vst [vmem:[#allocation2 + $0x68] sm:$0xff] %v205_v61 }
  0xbc   :  { %v229_v62 = vpop.f32.mrf.mxu2  ;;  %v253_v63 = vpop.f32.mrf.mxu3 }
  0xbd   :  { %283 = vst [vmem:[#allocation2 + $0xa8] sm:$0xff] %v229_v62 }
  0xbe   :  { %291 = vst [vmem:[#allocation2 + $0xe8] sm:$0xff] %v253_v63 }
  0xc0   :  { %v184_v0 = vpop.f32.mrf.mxu0  ;;  %v208_v1 = vpop.f32.mrf.mxu1 }
  0xc1   :  { %268 = vst [vmem:[#allocation2 + $0x30] sm:$0xff] %v184_v0 }
  0xc2   :  { %276 = vst [vmem:[#allocation2 + $0x70] sm:$0xff] %v208_v1 }
  0xc4   :  { %v232_v2 = vpop.f32.mrf.mxu2  ;;  %v256_v3 = vpop.f32.mrf.mxu3 }
  0xc5   :  { %284 = vst [vmem:[#allocation2 + $0xb0] sm:$0xff] %v232_v2 }
  0xc6   :  { %292 = vst [vmem:[#allocation2 + $0xf0] sm:$0xff] %v256_v3 }
  0xc8   :  { %v187_v4 = vpop.f32.mrf.mxu0  ;;  %v211_v5 = vpop.f32.mrf.mxu1 }
  0xc9   :  { %269 = vst [vmem:[#allocation2 + $0x38] sm:$0xff] %v187_v4 }
  0xca   :  { %277 = vst [vmem:[#allocation2 + $0x78] sm:$0xff] %v211_v5 }
  0xcc   :  { %v235_v6 = vpop.f32.mrf.mxu2  ;;  %v259_v7 = vpop.f32.mrf.mxu3 }
  0xcd   :  { %285 = vst [vmem:[#allocation2 + $0xb8] sm:$0xff] %v235_v6 }
  0xce   :  { %293 = vst [vmem:[#allocation2 + $0xf8] sm:$0xff] %v259_v7 }
  0xcf   :  { %306 = dma.vmem_to_hbm [thread:$0]  %s299_s1, 4096, %s301_s5, [#allocation3], %s398_s6, %s398_s6, %s399_s7  }
  0xd0   :  { %395 = dma.done.wait [#allocation3], 4096  }
  0xd1   :  { %396 = vsyncadd [#allocation3], 4294963200 }
  0xd2   :  { %311 = vsyncpa [#allocation3], 1 }

</bundles_post_ra>
